<compile_context>
chip_gen: v5e
topology: v5e:2x2
jax: 0.10.0
libtpu: 0.0.40
codegen_flags: <defaults>
</compile_context>

<pallas_src>
import jax
import jax.numpy as jnp
from jax import lax
from jax.experimental import pallas as pl
from jax.experimental.pallas import tpu as pltpu


def _temporal_frame_kernel(p_ref, w_ref, b_ref, o_ref):
    # p_ref: (Bb*64, K) bf16  im2col patches, offset-major rows per sample
    # w_ref: (K, 40)    bf16  conv weight, channels-last
    # b_ref: (1, 40)    f32   bias
    # o_ref: (Bb, 16, 40) f32 pooled output
    # Conv3d as one MXU matmul over the flattened receptive field (f32 acc).
    y = jnp.dot(p_ref[...], w_ref[...], preferred_element_type=jnp.float32)
    y = jnp.maximum(y + b_ref[...], 0.0)                     # bias + ReLU
    bb = o_ref.shape[0]
    for s in range(bb):                                      # static unroll
        ys = y[s * 64:(s + 1) * 64]                          # (64, 40), aligned
        # MaxPool3d((1,2,2)): rows grouped by (dh,dw) offset -> max of 4 slabs.
        m = jnp.maximum(jnp.maximum(ys[0:16], ys[16:32]),
                        jnp.maximum(ys[32:48], ys[48:64]))   # (16, 40)
        o_ref[s] = m.astype(o_ref.dtype)


def _extract_patches(frames, dtype=jnp.bfloat16):
    """frames (B, T, 2, 11, 11) -> patches (B, 64, K), pool-friendly row order.

    Single conv_general_dilated_patches op instead of a 64-slice Python im2col.
    """
    B, T, C, H, W = frames.shape
    x = jnp.transpose(frames, (0, 2, 1, 3, 4))               # (B, 2, T, 11, 11)
    p = lax.conv_general_dilated_patches(
        x, filter_shape=(T, 4, 4), window_strides=(1, 1, 1), padding='VALID',
        dimension_numbers=('NCDHW', 'OIDHW', 'NCDHW'))       # (B, K, 1, 8, 8)
    K = p.shape[1]
    p = p.reshape(B, K, 8, 8)
    p = jnp.transpose(p, (0, 2, 3, 1))                       # (B, oh, ow, K)
    p = p.reshape(B, 4, 2, 4, 2, K)                          # oh=(ph,dh), ow=(pw,dw)
    p = jnp.transpose(p, (0, 2, 4, 1, 3, 5))                 # (B, dh, dw, ph, pw, K)
    return p.reshape(B, 64, K).astype(dtype)                 # row = (dh*2+dw)*16+ph*4+pw


def prepare_params(weight, bias, dtype=jnp.bfloat16):
    """weight (40, 2, T, 4, 4), bias (40,) -> (w2d (K,40), b2d (1,40)).

    Hoisted out of the per-call path.  Uses the same patch op as
    _extract_patches so the K ordering matches exactly.
    """
    O, C, T, KH, KW = weight.shape
    wp = lax.conv_general_dilated_patches(
        weight, filter_shape=(T, KH, KW), window_strides=(1, 1, 1),
        padding='VALID', dimension_numbers=('NCDHW', 'OIDHW', 'NCDHW'))
    w2d = wp.reshape(O, C * T * KH * KW).T.astype(dtype)     # (K, 40)
    b2d = bias.reshape(1, O).astype(jnp.float32)
    return w2d, b2d


def temporal_frame_net(frames, w2d, b2d, *, block_b=4):
    """frames: (B, T, 2, 11, 11); (w2d, b2d) from prepare_params."""
    B = frames.shape[0]
    K, O = w2d.shape
    patches = _extract_patches(frames, dtype=w2d.dtype)      # (B, 64, K)

    # Batch tile: Bb=4 -> M=256 (v6e/v7x MXU); clamp for tiny batches.  For
    # large B this keeps multiple "parallel" grid steps so v7x's 2 TCs split work.
    bb = max(1, min(block_b, B))
    num_blocks = pl.cdiv(B, bb)
    Bp = num_blocks * bb
    if Bp != B:
        patches = jnp.pad(patches, ((0, Bp - B), (0, 0), (0, 0)))
    p2d = patches.reshape(Bp * 64, K)                        # (Bp*64, K)

    cost = pl.CostEstimate(
        flops=2 * Bp * 64 * K * O,
        transcendentals=0,
        bytes_accessed=(p2d.size * p2d.dtype.itemsize
                        + w2d.size * w2d.dtype.itemsize
                        + b2d.size * b2d.dtype.itemsize
                        + Bp * 16 * O * 4))

    out = pl.pallas_call(
        _temporal_frame_kernel,
        out_shape=jax.ShapeDtypeStruct((Bp, 16, O), jnp.float32),
        grid_spec=pltpu.PrefetchScalarGridSpec(
            num_scalar_prefetch=0,
            grid=(num_blocks,),
            in_specs=[
                pl.BlockSpec((bb * 64, K), lambda i: (i, 0)),
                pl.BlockSpec((K, O), lambda i: (0, 0)),
                pl.BlockSpec((1, O), lambda i: (0, 0)),
            ],
            out_specs=pl.BlockSpec((bb, 16, O), lambda i: (i, 0, 0)),
        ),
        compiler_params=pltpu.CompilerParams(
            dimension_semantics=("parallel",)),
        cost_estimate=cost,
    )(p2d, w2d, b2d)

    # (Bp, 16, 40) -> (B, 40, 1, 4, 4)  (PyTorch NCDHW)
    out = out[:B].reshape(B, 4, 4, O)
    out = jnp.transpose(out, (0, 3, 1, 2))[:, :, None, :, :]
    return out


def _reference(frames, weight, bias):
    """Pure-JAX f32 reference (conv3d + relu + maxpool3d) for correctness."""
    x = jnp.transpose(frames, (0, 2, 1, 3, 4))               # NCDHW
    y = lax.conv_general_dilated(
        x, weight, window_strides=(1, 1, 1), padding='VALID',
        dimension_numbers=('NCDHW', 'OIDHW', 'NCDHW'))
    y = y + bias[None, :, None, None, None]
    y = jnp.maximum(y, 0.0)
    y = lax.reduce_window(y, -jnp.inf, lax.max,
                          window_dimensions=(1, 1, 1, 2, 2),
                          window_strides=(1, 1, 1, 2, 2),
                          padding='VALID')
    return y


if __name__ == "__main__":
    key = jax.random.PRNGKey(0)
    k1, k2, k3 = jax.random.split(key, 3)

    B, T = 2, 8                                              # batch, num_frames
    frames = jax.random.normal(k1, (B, T, 2, 11, 11), dtype=jnp.float32)

    # Deterministic Conv3d(2, 40, (T, 4, 4)) params (PyTorch-style uniform init).
    fan_in = 2 * T * 4 * 4
    bound = 1.0 / (fan_in ** 0.5)
    weight = jax.random.uniform(k2, (40, 2, T, 4, 4), jnp.float32, -bound, bound)
    bias = jax.random.uniform(k3, (40,), jnp.float32, -bound, bound)

    w2d, b2d = prepare_params(weight, bias)                  # hoisted weight prep
    fwd = jax.jit(temporal_frame_net)

    out = fwd(frames, w2d, b2d)
    out = jax.block_until_ready(out)
    assert out.shape == (B, 40, 1, 4, 4)

    ref = _reference(frames, weight, bias)
    # bf16 inputs with f32 accumulation -> loosened tolerance vs f32 reference.
    assert jnp.allclose(out, ref, atol=3e-2, rtol=3e-2), \
        float(jnp.max(jnp.abs(out - ref)))

    print("KERNEL_OK")
</pallas_src>

<mosaic_0001>
module attributes {stable_mosaic.version = 11 : i64} {
  func.func @_temporal_frame_kernel(%arg0: i32, %arg1: memref<128x256xbf16, #tpu.memory_space<vmem>>, %arg2: memref<256x40xbf16, #tpu.memory_space<vmem>>, %arg3: memref<1x40xf32, #tpu.memory_space<vmem>>, %arg4: memref<2x16x40xf32, #tpu.memory_space<vmem>>) attributes {dimension_semantics = [#tpu.dimension_semantics<parallel>], iteration_bounds = array<i64: 1>, scalar_prefetch = 0 : i64, scratch_operands = 0 : i64, tpu.core_type = #tpu.core_type<tc>, window_params = [{transform_indices = @transform_0, window_bounds = array<i64: 128, 256>}, {pipeline_mode = #tpu.pipeline_mode<synchronous>, transform_indices = @transform_1, window_bounds = array<i64: 256, 40>}, {pipeline_mode = #tpu.pipeline_mode<synchronous>, transform_indices = @transform_2, window_bounds = array<i64: 1, 40>}, {transform_indices = @transform_3, window_bounds = array<i64: 2, 16, 40>}]} {
    %c0 = arith.constant 0 : index
    %c0_0 = arith.constant 0 : index
    %0 = vector.load %arg1[%c0, %c0_0] : memref<128x256xbf16, #tpu.memory_space<vmem>>, vector<128x256xbf16>
    %c0_1 = arith.constant 0 : index
    %c0_2 = arith.constant 0 : index
    %1 = vector.load %arg2[%c0_1, %c0_2] : memref<256x40xbf16, #tpu.memory_space<vmem>>, vector<256x40xbf16>
    %cst = arith.constant dense<0.000000e+00> : vector<128x40xf32>
    %2 = tpu.matmul %0, %1, %cst {dimension_numbers = #tpu.dot_dimension_numbers<[1], [0], [0], [1], [0, 0, 1, 1], [], []>} : vector<128x256xbf16>, vector<256x40xbf16>, vector<128x40xf32> -> vector<128x40xf32>
    %c0_3 = arith.constant 0 : index
    %c0_4 = arith.constant 0 : index
    %3 = vector.load %arg3[%c0_3, %c0_4] : memref<1x40xf32, #tpu.memory_space<vmem>>, vector<1x40xf32>
    %4 = vector.broadcast %3 : vector<1x40xf32> to vector<128x40xf32>
    %5 = arith.addf %2, %4 : vector<128x40xf32>
    %cst_5 = arith.constant 0.000000e+00 : f32
    %6 = vector.broadcast %cst_5 : f32 to vector<128x40xf32>
    %7 = arith.maximumf %5, %6 : vector<128x40xf32>
    %8 = vector.extract_strided_slice %7 {offsets = [0, 0], sizes = [64, 40], strides = [1, 1]} : vector<128x40xf32> to vector<64x40xf32>
    %9 = vector.extract_strided_slice %8 {offsets = [0, 0], sizes = [16, 40], strides = [1, 1]} : vector<64x40xf32> to vector<16x40xf32>
    %10 = vector.extract_strided_slice %8 {offsets = [16, 0], sizes = [16, 40], strides = [1, 1]} : vector<64x40xf32> to vector<16x40xf32>
    %11 = arith.maximumf %9, %10 : vector<16x40xf32>
    %12 = vector.extract_strided_slice %8 {offsets = [32, 0], sizes = [16, 40], strides = [1, 1]} : vector<64x40xf32> to vector<16x40xf32>
    %13 = vector.extract_strided_slice %8 {offsets = [48, 0], sizes = [16, 40], strides = [1, 1]} : vector<64x40xf32> to vector<16x40xf32>
    %14 = arith.maximumf %12, %13 : vector<16x40xf32>
    %15 = arith.maximumf %11, %14 : vector<16x40xf32>
    %c0_6 = arith.constant 0 : index
    %c0_7 = arith.constant 0 : index
    %c0_8 = arith.constant 0 : index
    %16 = vector.load %arg4[%c0_6, %c0_7, %c0_8] : memref<2x16x40xf32, #tpu.memory_space<vmem>>, vector<1x16x40xf32>
    %17 = vector.shape_cast %16 : vector<1x16x40xf32> to vector<16x40xf32>
    %18 = vector.shape_cast %15 : vector<16x40xf32> to vector<1x16x40xf32>
    tpu.vector_store %arg4[%c0_6, %c0_7, %c0_8], %18 {strides = array<i32>} : memref<2x16x40xf32, #tpu.memory_space<vmem>>, vector<1x16x40xf32>,
    %19 = vector.extract_strided_slice %7 {offsets = [64, 0], sizes = [64, 40], strides = [1, 1]} : vector<128x40xf32> to vector<64x40xf32>
    %20 = vector.extract_strided_slice %19 {offsets = [0, 0], sizes = [16, 40], strides = [1, 1]} : vector<64x40xf32> to vector<16x40xf32>
    %21 = vector.extract_strided_slice %19 {offsets = [16, 0], sizes = [16, 40], strides = [1, 1]} : vector<64x40xf32> to vector<16x40xf32>
    %22 = arith.maximumf %20, %21 : vector<16x40xf32>
    %23 = vector.extract_strided_slice %19 {offsets = [32, 0], sizes = [16, 40], strides = [1, 1]} : vector<64x40xf32> to vector<16x40xf32>
    %24 = vector.extract_strided_slice %19 {offsets = [48, 0], sizes = [16, 40], strides = [1, 1]} : vector<64x40xf32> to vector<16x40xf32>
    %25 = arith.maximumf %23, %24 : vector<16x40xf32>
    %26 = arith.maximumf %22, %25 : vector<16x40xf32>
    %c1 = arith.constant 1 : index
    %c0_9 = arith.constant 0 : index
    %c0_10 = arith.constant 0 : index
    %27 = vector.load %arg4[%c1, %c0_9, %c0_10] : memref<2x16x40xf32, #tpu.memory_space<vmem>>, vector<1x16x40xf32>
    %28 = vector.shape_cast %27 : vector<1x16x40xf32> to vector<16x40xf32>
    %29 = vector.shape_cast %26 : vector<16x40xf32> to vector<1x16x40xf32>
    tpu.vector_store %arg4[%c1, %c0_9, %c0_10], %29 {strides = array<i32>} : memref<2x16x40xf32, #tpu.memory_space<vmem>>, vector<1x16x40xf32>,
    return
  }
  func.func @transform_0(%arg0: i32) -> (i32, i32) {
    %c0_i32 = arith.constant 0 : i32
    %c0_i32_0 = arith.constant 0 : i32
    return %arg0, %c0_i32 : i32, i32
  }
  func.func @transform_1(%arg0: i32) -> (i32, i32) {
    %c0_i32 = arith.constant 0 : i32
    %c0_i32_0 = arith.constant 0 : i32
    %c0_i32_1 = arith.constant 0 : i32
    return %c0_i32, %c0_i32_0 : i32, i32
  }
  func.func @transform_2(%arg0: i32) -> (i32, i32) {
    %c0_i32 = arith.constant 0 : i32
    %c0_i32_0 = arith.constant 0 : i32
    %c0_i32_1 = arith.constant 0 : i32
    return %c0_i32, %c0_i32_0 : i32, i32
  }
  func.func @transform_3(%arg0: i32) -> (i32, i32, i32) {
    %c0_i32 = arith.constant 0 : i32
    %c0_i32_0 = arith.constant 0 : i32
    %c0_i32_1 = arith.constant 0 : i32
    return %arg0, %c0_i32, %c0_i32_0 : i32, i32, i32
  }
}

</mosaic_0001>

<bundles_post_ra>
// kernel: temporal_frame_net.1
= control target key start
LH: loop header
LB: loop body
LE: loop exit
PB: predicated region body
PF: predicated region fallthrough
CT: control target
= control target key end

     0   :  { %s797_s0 = inlined_call_operand.vmem [shape: bf16[128,256], index: 0, kind: input, shape index: {}]   ;;  %s798_s1 = inlined_call_operand.vmem [shape: bf16[256,40], index: 1, kind: input, shape index: {}]   ;;  %s799_s2 = inlined_call_operand.vmem [shape: f32[1,40], index: 2, kind: input, shape index: {}]   ;;  %s800_s3 = inlined_call_operand.hbm [shape: f32[2,16,40], index: 3, kind: output, shape index: {}]  }
   0x1   :  { %v544_v0 = vld [vmem:[%s798_s1 + $0x38] sm:$0xff]  ;;  %v543_v2 = vld [vmem:[%s798_s1 + $0x30] sm:$0xff]  ;;  %v542_v4 = vld [vmem:[%s798_s1 + $0x28] sm:$0xff] }
   0x2   :  { %v552_v1 = vld [vmem:[%s798_s1 + $0x78] sm:$0xff]  ;;  %243 = vmatpush.bf16.msra.mxu0 %v544_v0  ;;  %553 = vmatpush.bf16.msra.mxu2 %v544_v0  ;;  %v551_v3 = vld [vmem:[%s798_s1 + $0x70] sm:$0xff]  ;;  %v550_v5 = vld [vmem:[%s798_s1 + $0x68] sm:$0xff] }
   0x3   :  { %292 = vmatpush.bf16.msra.mxu1 %v552_v1  ;;  %561 = vmatpush.bf16.msra.mxu3 %v552_v1 }
   0x6   :  { %244 = vmatpush.bf16.msra.mxu0 %v543_v2  ;;  %554 = vmatpush.bf16.msra.mxu2 %v543_v2 }
   0x7   :  { %293 = vmatpush.bf16.msra.mxu1 %v551_v3  ;;  %562 = vmatpush.bf16.msra.mxu3 %v551_v3 }
   0x8   :  { %8 = vsyncpa [#allocation3], 0  ;;  %v541_v6 = vld [vmem:[%s798_s1 + $0x20] sm:$0xff]  ;;  %v540_v8 = vld [vmem:[%s798_s1 + $0x18] sm:$0xff]  ;;  %vm363_vm0 = vcmask 326656   ;;  %s381_s28 = sshll.u32 %s800_s3, 4  ;;  %s382_s28 = int_to_ptr.hbm [resolvable:$true] %s381_s28 }
   0x9   :  { %v549_v7 = vld [vmem:[%s798_s1 + $0x60] sm:$0xff]  ;;  %v548_v9 = vld [vmem:[%s798_s1 + $0x58] sm:$0xff]  ;;  %v539_v10 = vld [vmem:[%s798_s1 + $0x10] sm:$0xff]  ;;  %s600_s29 = smov 128   ;;  %s601_s30 = smov 8  }
   0xa   :  { %245 = vmatpush.bf16.msra.mxu0 %v542_v4  ;;  %555 = vmatpush.bf16.msra.mxu2 %v542_v4  ;;  %v547_v11 = vld [vmem:[%s798_s1 + $0x50] sm:$0xff]  ;;  %v538_v12 = vld [vmem:[%s798_s1 + $0x8] sm:$0xff]  ;;  %v537_v14 = vld [vmem:[%s798_s1] sm:$0xff] }
   0xb   :  { %294 = vmatpush.bf16.msra.mxu1 %v550_v5  ;;  %563 = vmatpush.bf16.msra.mxu3 %v550_v5  ;;  %v546_v13 = vld [vmem:[%s798_s1 + $0x48] sm:$0xff]  ;;  %v545_v15 = vld [vmem:[%s798_s1 + $0x40] sm:$0xff]  ;;  %v403_v28 = vld [vmem:[%s797_s0 + $0x10] sm:$0xf] }
   0xc   :  { %v395_v16 = vld [vmem:[%s797_s0] sm:$0xf]  ;;  %v522_v17 = vld [vmem:[%s797_s0 + $0x4] sm:$0xf0]  ;;  %v521_v20 = vld [vmem:[%s797_s0 + $0x4] sm:$0xf] }
   0xd   :  { %v427_v18 = vld [vmem:[%s797_s0 + $0x40] sm:$0xf]  ;;  %v530_v19 = vld [vmem:[%s797_s0 + $0x44] sm:$0xf0]  ;;  %v397_v21 = vld [vmem:[%s797_s0 + $0x8] sm:$0xf0]  ;;  %v396_v24 = vor.u32 %v522_v17, %v395_v16 }
   0xe   :  { %246 = vmatpush.bf16.msra.mxu0 %v541_v6  ;;  %556 = vmatpush.bf16.msra.mxu2 %v541_v6  ;;  %v529_v22 = vld [vmem:[%s797_s0 + $0x44] sm:$0xf]  ;;  %v429_v23 = vld [vmem:[%s797_s0 + $0x48] sm:$0xf0]  ;;  %v428_v25 = vor.u32 %v530_v19, %v427_v18  ;;  %v400_v26 = vor.u32 %v521_v20, %v397_v21  ;;  %v524_v29 = vld [vmem:[%s797_s0 + $0x14] sm:$0xf0] }
   0xf   :  { %295 = vmatpush.bf16.msra.mxu1 %v549_v7  ;;  %564 = vmatpush.bf16.msra.mxu3 %v549_v7  ;;  %v432_v27 = vor.u32 %v529_v22, %v429_v23  ;;  %v435_v30 = vld [vmem:[%s797_s0 + $0x50] sm:$0xf]  ;;  %v532_v31 = vld [vmem:[%s797_s0 + $0x54] sm:$0xf0]  ;;  %v523_v32 = vld [vmem:[%s797_s0 + $0x14] sm:$0xf]  ;;  %v404_v36 = vor.u32 %v524_v29, %v403_v28 }
  0x10   :  { %v405_v33 = vld [vmem:[%s797_s0 + $0x18] sm:$0xf0]  ;;  %v531_v34 = vld [vmem:[%s797_s0 + $0x54] sm:$0xf]  ;;  %v436_v37 = vor.u32 %v532_v31, %v435_v30  ;;  %v411_v40 = vld [vmem:[%s797_s0 + $0x20] sm:$0xf] }
  0x11   :  { %v437_v35 = vld [vmem:[%s797_s0 + $0x58] sm:$0xf0]  ;;  %v408_v38 = vor.u32 %v523_v32, %v405_v33  ;;  %v526_v41 = vld [vmem:[%s797_s0 + $0x24] sm:$0xf0]  ;;  %v443_v42 = vld [vmem:[%s797_s0 + $0x60] sm:$0xf] }
  0x12   :  { %247 = vmatpush.bf16.msra.mxu0 %v540_v8  ;;  %557 = vmatpush.bf16.msra.mxu2 %v540_v8  ;;  %v440_v39 = vor.u32 %v531_v34, %v437_v35  ;;  %v534_v43 = vld [vmem:[%s797_s0 + $0x64] sm:$0xf0]  ;;  %v525_v44 = vld [vmem:[%s797_s0 + $0x24] sm:$0xf]  ;;  %v413_v45 = vld [vmem:[%s797_s0 + $0x28] sm:$0xf0]  ;;  %v412_v48 = vor.u32 %v526_v41, %v411_v40 }
  0x13   :  { %296 = vmatpush.bf16.msra.mxu1 %v548_v9  ;;  %565 = vmatpush.bf16.msra.mxu3 %v548_v9  ;;  %v533_v46 = vld [vmem:[%s797_s0 + $0x64] sm:$0xf]  ;;  %v445_v47 = vld [vmem:[%s797_s0 + $0x68] sm:$0xf0]  ;;  %v444_v49 = vor.u32 %v534_v43, %v443_v42  ;;  %v416_v50 = vor.u32 %v525_v44, %v413_v45  ;;  %v419_v52 = vld [vmem:[%s797_s0 + $0x30] sm:$0xf] }
  0x14   :  { %v448_v51 = vor.u32 %v533_v46, %v445_v47  ;;  %v528_v53 = vld [vmem:[%s797_s0 + $0x34] sm:$0xf0]  ;;  %v451_v54 = vld [vmem:[%s797_s0 + $0x70] sm:$0xf]  ;;  %v527_v56 = vld [vmem:[%s797_s0 + $0x34] sm:$0xf] }
  0x15   :  { %v536_v55 = vld [vmem:[%s797_s0 + $0x74] sm:$0xf0]  ;;  %v421_v57 = vld [vmem:[%s797_s0 + $0x38] sm:$0xf0]  ;;  %v535_v58 = vld [vmem:[%s797_s0 + $0x74] sm:$0xf]  ;;  %v420_v60 = vor.u32 %v528_v53, %v419_v52 }
  0x16   :  { %248 = vmatpush.bf16.msra.mxu0 %v539_v10  ;;  %558 = vmatpush.bf16.msra.mxu2 %v539_v10  ;;  %v453_v59 = vld [vmem:[%s797_s0 + $0x78] sm:$0xf0]  ;;  %v452_v61 = vor.u32 %v536_v55, %v451_v54  ;;  %v424_v62 = vor.u32 %v527_v56, %v421_v57  ;;  %v771_v21 = vld [vmem:[%s799_s2] ss:$0 sm:$0xff]  ;;  %s599_s2 = smov [#allocation2]  }
  0x17   :  { %297 = vmatpush.bf16.msra.mxu1 %v547_v11  ;;  %566 = vmatpush.bf16.msra.mxu3 %v547_v11  ;;  %v456_v63 = vor.u32 %v535_v58, %v453_v59  ;;  %s379_s1 = sshll.u32 %s599_s2, 4  ;;  %s380_s1 = int_to_ptr.vmem [resolvable:$true] %s379_s1 }
  0x1a   :  { %249 = vmatpush.bf16.msra.mxu0 %v538_v12  ;;  %559 = vmatpush.bf16.msra.mxu2 %v538_v12 }
  0x1b   :  { %298 = vmatpush.bf16.msra.mxu1 %v546_v13  ;;  %567 = vmatpush.bf16.msra.mxu3 %v546_v13 }
  0x1e   :  { %250 = vmatpush.bf16.msra.mxu0 %v537_v14  ;;  %560 = vmatpush.bf16.msra.mxu2 %v537_v14 }
  0x1f   :  { %299 = vmatpush.bf16.msra.mxu1 %v545_v15  ;;  %568 = vmatpush.bf16.msra.mxu3 %v545_v15 }
  0x21   :  { %251 = vmatmul.bf16.vlgmr.msra.gmra.mxu0 %v396_v24  ;;  %271 = vmatmul.bf16.vlgmr.msra.gmra.mxu2 %v428_v25 }
  0x22   :  { %300 = vmatmul.bf16.vlgmr.msra.gmra.mxu1 %v400_v26  ;;  %320 = vmatmul.bf16.vlgmr.msra.gmra.mxu3 %v432_v27 }
  0x31   :  { %256 = vmatmul.bf16.gmra.mxu0 %v404_v36  ;;  %276 = vmatmul.bf16.gmra.mxu2 %v436_v37 }
  0x32   :  { %305 = vmatmul.bf16.gmra.mxu1 %v408_v38  ;;  %325 = vmatmul.bf16.gmra.mxu3 %v440_v39 }
  0x41   :  { %261 = vmatmul.bf16.gmra.mxu0 %v412_v48  ;;  %281 = vmatmul.bf16.gmra.mxu2 %v444_v49 }
  0x42   :  { %310 = vmatmul.bf16.gmra.mxu1 %v416_v50  ;;  %330 = vmatmul.bf16.gmra.mxu3 %v448_v51 }
  0x51   :  { %266 = vmatmul.bf16.gmra.mxu0 %v420_v60  ;;  %286 = vmatmul.bf16.gmra.mxu2 %v452_v61 }
  0x52   :  { %315 = vmatmul.bf16.gmra.mxu1 %v424_v62  ;;  %335 = vmatmul.bf16.gmra.mxu3 %v456_v63 }
  0x9e   :  { %v252_v0 = vpop.f32.mrf.mxu0 }
  0x9f   :  { %v301_v1 = vpop.f32.mrf.mxu1  ;;  %v253_v24 = vadd.f32 %v771_v21, %v252_v0 }
  0xa1   :  { %v302_v31 = vadd.f32 %v301_v1, %v253_v24 }
  0xa3   :  { %v341_v42 = vmax.f32 %v302_v31, 0.0 }
  0xa4   :  { %v272_v2 = vpop.f32.mrf.mxu2 }
  0xa5   :  { %v321_v3 = vpop.f32.mrf.mxu3  ;;  %v273_v35 = vadd.f32 %v771_v21, %v272_v2 }
  0xa6   :  { %v254_v4 = vpop.f32.mrf.mxu0 }
  0xa7   :  { %v303_v5 = vpop.f32.mrf.mxu1  ;;  %v255_v40 = vadd.f32 %v771_v21, %v254_v4  ;;  %v322_v46 = vadd.f32 %v321_v3, %v273_v35 }
  0xa9   :  { %v304_v54 = vadd.f32 %v303_v5, %v255_v40  ;;  %v349_v62 = vmax.f32 %v322_v46, 0.0 }
  0xac   :  { %v274_v6 = vpop.f32.mrf.mxu2 }
  0xad   :  { %v766_v7 = vpop.f32.mrf.mxu3  ;;  %v275_v63 = vadd.f32 %v771_v21, %v274_v6 }
  0xae   :  { %v257_v8 = vpop.f32.mrf.mxu0 }
  0xaf   :  { %v306_v9 = vpop.f32.mrf.mxu1  ;;  %v258_v23 = vadd.f32 %v771_v21, %v257_v8  ;;  %v342_v8 = vmax.f32 %v304_v54, 0.0 }
  0xb1   :  { %v307_v27 = vadd.f32 %v306_v9, %v258_v23 }
  0xb3   :  { %v343_v37 = vmax.f32 %v307_v27, 0.0 }
  0xb4   :  { %v277_v10 = vpop.f32.mrf.mxu2 }
  0xb5   :  { %v326_v11 = vpop.f32.mrf.mxu3  ;;  %v278_v29 = vadd.f32 %v771_v21, %v277_v10  ;;  %v357_v49 = vmax.f32 %v341_v42, %v343_v37 }
  0xb6   :  { %v259_v12 = vpop.f32.mrf.mxu0 }
  0xb7   :  { %v308_v13 = vpop.f32.mrf.mxu1  ;;  %v260_v36 = vadd.f32 %v771_v21, %v259_v12  ;;  %v327_v41 = vadd.f32 %v326_v11, %v278_v29 }
  0xb9   :  { %v309_v47 = vadd.f32 %v308_v13, %v260_v36  ;;  %v351_v55 = vmax.f32 %v327_v41, 0.0 }
  0xbb   :  { %v344_v0 = vmax.f32 %v309_v47, 0.0  ;;  %v366_v9 = vmax.f32 %v349_v62, %v351_v55 }
  0xbc   :  { %v279_v14 = vpop.f32.mrf.mxu2 }
  0xbd   :  { %v328_v15 = vpop.f32.mrf.mxu3  ;;  %v280_v56 = vadd.f32 %v771_v21, %v279_v14  ;;  %v324_v14 = vadd.f32 %v766_v7, %v275_v63 }
  0xbe   :  { %v262_v16 = vpop.f32.mrf.mxu0 }
  0xbf   :  { %v311_v17 = vpop.f32.mrf.mxu1  ;;  %v263_v25 = vadd.f32 %v771_v21, %v262_v16  ;;  %v329_v10 = vadd.f32 %v328_v15, %v280_v56  ;;  %v358_v16 = vmax.f32 %v342_v8, %v344_v0 }
  0xc1   :  { %v312_v32 = vadd.f32 %v311_v17, %v263_v25  ;;  %v352_v23 = vmax.f32 %v329_v10, 0.0 }
  0xc3   :  { %v345_v43 = vmax.f32 %v312_v32, 0.0 }
  0xc4   :  { %v282_v18 = vpop.f32.mrf.mxu2 }
  0xc5   :  { %v331_v19 = vpop.f32.mrf.mxu3  ;;  %v283_v38 = vadd.f32 %v771_v21, %v282_v18 }
  0xc6   :  { %v264_v20 = vpop.f32.mrf.mxu0 }
  0xc7   :  { %v313_v22 = vpop.f32.mrf.mxu1  ;;  %v265_v44 = vadd.f32 %v771_v21, %v264_v20  ;;  %v332_v50 = vadd.f32 %v331_v19, %v283_v38 }
  0xc9   :  { %v314_v58 = vadd.f32 %v313_v22, %v265_v44  ;;  %v353_v2 = vmax.f32 %v332_v50, 0.0 }
  0xcb   :  { %v346_v11 = vmax.f32 %v314_v58, 0.0 }
  0xcc   :  { %v284_v26 = vpop.f32.mrf.mxu2 }
  0xcd   :  { %v333_v28 = vpop.f32.mrf.mxu3  ;;  %v285_v3 = vadd.f32 %v771_v21, %v284_v26  ;;  %v350_v26 = vmax.f32 %v324_v14, 0.0 }
  0xce   :  { %v267_v30 = vpop.f32.mrf.mxu0 }
  0xcf   :  { %v268_v33 = vadd.f32 %v771_v21, %v267_v30  ;;  %v316_v34 = vpop.f32.mrf.mxu1  ;;  %v334_v6 = vadd.f32 %v333_v28, %v285_v3  ;;  %v367_v7 = vmax.f32 %v350_v26, %v352_v23 }
  0xd1   :  { %v317_v39 = vadd.f32 %v316_v34, %v268_v33  ;;  %v354_v15 = vmax.f32 %v334_v6, 0.0 }
  0xd3   :  { %v347_v45 = vmax.f32 %v317_v39, 0.0 }
  0xd4   :  { %v287_v48 = vpop.f32.mrf.mxu2 }
  0xd5   :  { %v359_v51 = vmax.f32 %v345_v43, %v347_v45  ;;  %v288_v52 = vadd.f32 %v771_v21, %v287_v48  ;;  %v336_v53 = vpop.f32.mrf.mxu3 }
  0xd6   :  { %v269_v57 = vpop.f32.mrf.mxu0 }
  0xd7   :  { %v361_v59 = vmax.f32 %v357_v49, %v359_v51  ;;  %v337_v60 = vadd.f32 %v336_v53, %v288_v52  ;;  %v270_v61 = vadd.f32 %v771_v21, %v269_v57  ;;  %v318_v1 = vpop.f32.mrf.mxu1 }
  0xd9   :  { %364 = vst.msk [vmem:[#allocation2] sm:$0xff] %vm363_vm0, %v361_v59  ;;  %v355_v4 = vmax.f32 %v337_v60, 0.0  ;;  %v319_v5 = vadd.f32 %v318_v1, %v270_v61 }
  0xdb   :  { %v368_v12 = vmax.f32 %v353_v2, %v355_v4  ;;  %v348_v13 = vmax.f32 %v319_v5, 0.0 }
  0xdc   :  { %v289_v17 = vpop.f32.mrf.mxu2 }
  0xdd   :  { %v370_v18 = vmax.f32 %v366_v9, %v368_v12  ;;  %v360_v19 = vmax.f32 %v346_v11, %v348_v13  ;;  %v290_v20 = vadd.f32 %v771_v21, %v289_v17  ;;  %v338_v22 = vpop.f32.mrf.mxu3 }
  0xdf   :  { %373 = vst.msk [vmem:[#allocation2 + $0x10] sm:$0xff] %vm363_vm0, %v370_v18  ;;  %v362_v24 = vmax.f32 %v358_v16, %v360_v19  ;;  %v339_v25 = vadd.f32 %v338_v22, %v290_v20 }
  0xe1   :  { %365 = vst.msk [vmem:[#allocation2 + $0x8] sm:$0xff] %vm363_vm0, %v362_v24  ;;  %v356_v27 = vmax.f32 %v339_v25, 0.0 }
  0xe3   :  { %v369_v28 = vmax.f32 %v354_v15, %v356_v27 }
  0xe5   :  { %v371_v21 = vmax.f32 %v367_v7, %v369_v28 }
  0xe7   :  { %374 = vst.msk [vmem:[#allocation2 + $0x18] sm:$0xff] %vm363_vm0, %v371_v21 }
  0xe8   :  { %387 = dma.vmem_to_hbm [thread:$0]  %s380_s1, 512, %s382_s28, [#allocation3], %s600_s29, %s600_s29, %s601_s30  }
  0xe9   :  { %597 = dma.done.wait [#allocation3], 512  }
  0xea   :  { %598 = vsyncadd [#allocation3], 4294966784 }
  0xeb   :  { %392 = vsyncpa [#allocation3], 1 }

</bundles_post_ra>
